<compile_context>
chip_gen: v5e
topology: v5e:2x2
jax: 0.10.0
libtpu: 0.0.40
codegen_flags: <defaults>
</compile_context>

<pallas_src>
import jax
import jax.numpy as jnp
from jax import lax
from jax.experimental import pallas as pl
from jax.experimental.pallas import tpu as pltpu

TOTAL_EPOCHS = 10  # stands in for the global `opt.epoch`
_LANES = 128


def _cdiv(a, b):
    return -(-a // b)


def _round_up(x, m):
    return _cdiv(x, m) * m


def _make_sploss_kernel(mul, rows, tile_rows, chunk_rows, inner, needs_row_mask):
    """Build the kernel with every scalar baked in as a trace-time constant."""
    n_chunks = tile_rows // chunk_rows
    pow_const = float(0.5 ** mul)  # folds |sigmoid(x)-0.5| = 0.5 * tanh(|x|/2)

    def kernel(x_ref, out_ref):
        p = pl.program_id(0)
        s = pl.program_id(1)

        @pl.when(s == 0)
        def _():
            out_ref[...] = jnp.zeros_like(out_ref)

        block_row0 = (p * inner + s) * tile_rows  # logical first row of block

        def chunk_body(c, acc):
            r0 = pl.multiple_of(c * chunk_rows, chunk_rows)
            x = x_ref[pl.ds(r0, chunk_rows), :].astype(jnp.float32)
            # |sigmoid(x) - 0.5| = 0.5 * tanh(|x| / 2); the 0.5 is folded into
            # pow_const / the specialized branches below.
            t = jnp.tanh(0.5 * jnp.abs(x))
            if mul == 1.0:                      # epoch == total_epochs
                powed = 0.5 * t
            elif mul == 2.0:                    # epoch == 0
                powed = 0.25 * (t * t)
            else:
                # t ** mul via exp(mul*log(t)); guard t == 0 so it matches
                # torch.pow(0., mul) == 0 and swallows garbage in masked rows.
                powed = jnp.where(
                    t > 0.0,
                    pow_const * jnp.exp(mul * jnp.log(jnp.maximum(t, 1e-38))),
                    0.0)
            loss_map = 0.5 - powed
            if needs_row_mask:
                row = lax.broadcasted_iota(jnp.int32, (chunk_rows, _LANES), 0)
                g_row = block_row0 + c * chunk_rows + row
                loss_map = jnp.where(g_row < rows, loss_map, 0.0)
            # Sublane fold on the VPU: (chunk,128) -> (chunk//8,8,128) -> (8,128)
            return acc + jnp.sum(loss_map.reshape(-1, 8, _LANES), axis=0)

        acc0 = jnp.zeros((8, _LANES), jnp.float32)
        out_ref[...] += lax.fori_loop(0, n_chunks, chunk_body, acc0)

    return kernel


def sp_loss(pred, label, epoch, total_epochs=TOTAL_EPOCHS, *,
            tile_rows=8192, chunk_rows=512, num_parts=1, core_parallel=False):
    """Pallas SPLoss.  `label` is accepted but unused, matching the torch code.

    tile_rows     rows (of 128 lanes) per grid step; 8192 -> 4 MiB f32 blocks.
    chunk_rows    rows per inner fori_loop step (bounds VMEM intermediates).
    num_parts     leading grid axis; set 2 on v7x (two TensorCores per chip).
    core_parallel map the leading axis to CORE_PARALLEL (v7x only).
    """
    del label
    total = int(pred.size)
    if total == 0:
        return jnp.float32(float("nan"))  # mean of empty, matches torch

    # mul is data independent and epoch is host-concrete: bake it in.
    mul = float(2.0 ** (1.0 - float(epoch) / float(total_epochs)))

    itemsize = jnp.dtype(pred.dtype).itemsize
    granule = {4: 8, 2: 16, 1: 32}.get(itemsize, 8)  # sublane packing granule

    # Lane-remainder pad only (and a tiny floor of `granule` rows so the 2-D
    # view is never smaller than one block granule).  Each padded zero
    # contributes exactly 0.5 to the sum and is subtracted below.
    # TODO(synk): the <128-element lane remainder still costs a full-array pad
    # copy; a 1-D BlockSpec + lane mask would remove even that.
    padded_len = max(_round_up(total, _LANES), granule * _LANES)
    pad_zeros = padded_len - total
    x_flat = pred.reshape(-1)
    if pad_zeros:
        x_flat = jnp.concatenate(
            [x_flat, jnp.zeros((pad_zeros,), dtype=x_flat.dtype)])
    rows = padded_len // _LANES
    x2d = x_flat.reshape(rows, _LANES)

    # --- tile sizing (all Python ints; blocks never exceed the array) -------
    num_parts = max(1, int(num_parts))
    tile_rows = max(granule, _round_up(int(tile_rows), granule))
    tile_rows = min(tile_rows, _round_up(_cdiv(rows, num_parts), granule))
    if tile_rows > rows:
        tile_rows = (rows // granule) * granule
    chunk_rows = max(granule, min(_round_up(int(chunk_rows), granule), tile_rows))
    tile_rows = (tile_rows // chunk_rows) * chunk_rows  # multiple of chunk
    inner = _cdiv(rows, num_parts * tile_rows)

    needs_row_mask = (num_parts * inner * tile_rows) != rows
    last_block = _cdiv(rows, tile_rows) - 1
    needs_clamp = (num_parts * inner) > (last_block + 1)

    def x_index(p, s):
        b = p * inner + s
        if needs_clamp:  # keep DMA in bounds; masked rows contribute zero
            b = jnp.minimum(b, last_block)
        return (b, 0)

    kernel = _make_sploss_kernel(mul, rows, tile_rows, chunk_rows, inner,
                                 needs_row_mask)

    if core_parallel:
        dim_sem = (pltpu.CORE_PARALLEL, pltpu.ARBITRARY)
    else:
        dim_sem = ("parallel", "arbitrary")

    partials = pl.pallas_call(
        kernel,
        out_shape=jax.ShapeDtypeStruct((num_parts * 8, _LANES), jnp.float32),
        grid_spec=pltpu.PrefetchScalarGridSpec(
            num_scalar_prefetch=0,
            grid=(num_parts, inner),
            in_specs=[pl.BlockSpec((tile_rows, _LANES), x_index)],
            out_specs=pl.BlockSpec((8, _LANES), lambda p, s: (p, 0)),
        ),
        compiler_params=pltpu.CompilerParams(
            dimension_semantics=dim_sem,
            vmem_limit_bytes=32 * 1024 * 1024),
    )(x2d)

    # Tiny final cross-lane reduce + pad correction + mean in plain JAX.
    total_sum = jnp.sum(partials) - 0.5 * jnp.float32(pad_zeros)
    return total_sum / jnp.float32(total)


def sp_loss_ref(pred, epoch, total_epochs=TOTAL_EPOCHS):
    s = jax.nn.sigmoid(pred.astype(jnp.float32))
    mul = 2.0 ** (1.0 - float(epoch) / float(total_epochs))
    loss_map = 0.5 - jnp.abs(s - 0.5) ** mul
    return jnp.mean(loss_map)


if __name__ == "__main__":
    key = jax.random.PRNGKey(0)
    k1, k2, k3, k4 = jax.random.split(key, 4)
    epoch = 3

    # 1) Small NCHW prediction map (tiles exactly -> fully copy-free path).
    pred = jax.random.normal(k1, (2, 4, 16, 16), dtype=jnp.float32)
    label = (jax.random.uniform(k2, (2, 4, 16, 16)) > 0.5).astype(jnp.float32)
    loss = jax.block_until_ready(sp_loss(pred, label, epoch))
    ref = jax.block_until_ready(sp_loss_ref(pred, epoch))
    assert jnp.allclose(loss, ref, rtol=1e-5, atol=1e-5), (loss, ref)

    # 2) Awkward element count exercising the <128-lane pad + correction.
    pred2 = jax.random.normal(k3, (2, 3, 17, 19), dtype=jnp.float32)
    loss2 = jax.block_until_ready(sp_loss(pred2, None, epoch))
    ref2 = jax.block_until_ready(sp_loss_ref(pred2, epoch))
    assert jnp.allclose(loss2, ref2, rtol=1e-5, atol=1e-5), (loss2, ref2)

    # 3) Non-divisible row count exercising the in-kernel row mask, the
    #    out-of-range block clamp, a 2-part grid, and the mul==2 / mul==1
    #    trace-time specializations.
    pred3 = jax.random.normal(k4, (20, 128), dtype=jnp.float32)
    for ep in (0, epoch, TOTAL_EPOCHS):
        loss3 = jax.block_until_ready(
            sp_loss(pred3, None, ep, tile_rows=8, chunk_rows=8, num_parts=2))
        ref3 = jax.block_until_ready(sp_loss_ref(pred3, ep))
        assert jnp.allclose(loss3, ref3, rtol=1e-5, atol=1e-5), (ep, loss3, ref3)

    # 4) bf16 logits streamed without wrapper upcast (halves HBM bytes).
    pred4 = jax.random.normal(k1, (2, 4, 16, 16), dtype=jnp.bfloat16)
    loss4 = jax.block_until_ready(sp_loss(pred4, None, epoch))
    ref4 = jax.block_until_ready(sp_loss_ref(pred4, epoch))
    assert jnp.allclose(loss4, ref4, rtol=1e-5, atol=1e-5), (loss4, ref4)

    print("KERNEL_OK")
</pallas_src>

<mosaic_0001>
module attributes {stable_mosaic.version = 11 : i64} {
  func.func @kernel(%arg0: i32, %arg1: i32, %arg2: memref<16x128xf32, #tpu.memory_space<vmem>>, %arg3: memref<8x128xf32, #tpu.memory_space<vmem>>) attributes {dimension_semantics = [#tpu.dimension_semantics<parallel>, #tpu.dimension_semantics<arbitrary>], iteration_bounds = array<i64: 1, 1>, scalar_prefetch = 0 : i64, scratch_operands = 0 : i64, tpu.core_type = #tpu.core_type<tc>, window_params = [{transform_indices = @transform_0, window_bounds = array<i64: 16, 128>}, {transform_indices = @transform_1, window_bounds = array<i64: 8, 128>}]} {
    %c0_i32 = arith.constant 0 : i32
    %0 = arith.cmpi eq, %arg1, %c0_i32 : i32
    %1 = arith.extui %0 : i1 to i32
    %c0_i32_0 = arith.constant 0 : i32
    %2 = arith.cmpi ne, %1, %c0_i32_0 : i32
    scf.if %2 {
      %cst_14 = arith.constant 0.000000e+00 : f32
      %32 = vector.broadcast %cst_14 : f32 to vector<8x128xf32>
      %c0_15 = arith.constant 0 : index
      %c0_16 = arith.constant 0 : index
      %33 = vector.load %arg3[%c0_15, %c0_16] : memref<8x128xf32, #tpu.memory_space<vmem>>, vector<8x128xf32>
      tpu.vector_store %arg3[%c0_15, %c0_16], %32 {strides = array<i32>} : memref<8x128xf32, #tpu.memory_space<vmem>>, vector<8x128xf32>,
    } else {
    }
    %cst = arith.constant 0.000000e+00 : f32
    %3 = vector.broadcast %cst : f32 to vector<8x128xf32>
    %c0 = arith.constant 0 : index
    %c0_1 = arith.constant 0 : index
    %4 = vector.load %arg3[%c0, %c0_1] : memref<8x128xf32, #tpu.memory_space<vmem>>, vector<8x128xf32>
    %c0_i32_2 = arith.constant 0 : i32
    %c16_i32 = arith.constant 16 : i32
    %5 = arith.muli %c0_i32_2, %c16_i32 : i32
    %6 = tpu.assume_multiple %5, 16 : i32
    %7 = arith.index_cast %6 : i32 to index
    %c0_3 = arith.constant 0 : index
    %8 = vector.load %arg2[%7, %c0_3] : memref<16x128xf32, #tpu.memory_space<vmem>>, vector<16x128xf32>
    %9 = math.absf %8 : vector<16x128xf32>
    %cst_4 = arith.constant 5.000000e-01 : f32
    %10 = vector.broadcast %cst_4 : f32 to vector<16x128xf32>
    %11 = arith.mulf %10, %9 : vector<16x128xf32>
    %12 = math.tanh %11 : vector<16x128xf32>
    %cst_5 = arith.constant 0.000000e+00 : f32
    %13 = vector.broadcast %cst_5 : f32 to vector<16x128xf32>
    %14 = arith.cmpf ogt, %12, %13 : vector<16x128xf32>
    %cst_6 = arith.constant 9.99999935E-39 : f32
    %15 = vector.broadcast %cst_6 : f32 to vector<16x128xf32>
    %16 = arith.maximumf %12, %15 : vector<16x128xf32>
    %17 = math.log %16 : vector<16x128xf32>
    %cst_7 = arith.constant 1.6245048 : f32
    %18 = vector.broadcast %cst_7 : f32 to vector<16x128xf32>
    %19 = arith.mulf %18, %17 : vector<16x128xf32>
    %20 = math.exp %19 : vector<16x128xf32>
    %cst_8 = arith.constant 0.324321181 : f32
    %21 = vector.broadcast %cst_8 : f32 to vector<16x128xf32>
    %22 = arith.mulf %21, %20 : vector<16x128xf32>
    %cst_9 = arith.constant 0.000000e+00 : f32
    %23 = vector.broadcast %cst_9 : f32 to vector<16x128xf32>
    %24 = arith.select %14, %22, %23 : vector<16x128xi1>, vector<16x128xf32>
    %cst_10 = arith.constant 5.000000e-01 : f32
    %25 = vector.broadcast %cst_10 : f32 to vector<16x128xf32>
    %26 = arith.subf %25, %24 : vector<16x128xf32>
    %27 = vector.shape_cast %26 : vector<16x128xf32> to vector<2x8x128xf32>
    %cst_11 = arith.constant dense<0.000000e+00> : vector<8x128xf32>
    %28 = vector.multi_reduction <add>, %27, %cst_11 [0] : vector<2x8x128xf32> to vector<8x128xf32>
    %29 = arith.addf %3, %28 : vector<8x128xf32>
    %c1_i32 = arith.constant 1 : i32
    %30 = arith.addf %4, %29 : vector<8x128xf32>
    %c0_12 = arith.constant 0 : index
    %c0_13 = arith.constant 0 : index
    %31 = vector.load %arg3[%c0_12, %c0_13] : memref<8x128xf32, #tpu.memory_space<vmem>>, vector<8x128xf32>
    tpu.vector_store %arg3[%c0_12, %c0_13], %30 {strides = array<i32>} : memref<8x128xf32, #tpu.memory_space<vmem>>, vector<8x128xf32>,
    return
  }
  func.func @transform_0(%arg0: i32, %arg1: i32) -> (i32, i32) {
    %c1_i32 = arith.constant 1 : i32
    %0 = arith.muli %arg0, %c1_i32 : i32
    %1 = arith.addi %0, %arg1 : i32
    %c0_i32 = arith.constant 0 : i32
    %c0_i32_0 = arith.constant 0 : i32
    return %1, %c0_i32 : i32, i32
  }
  func.func @transform_1(%arg0: i32, %arg1: i32) -> (i32, i32) {
    %c0_i32 = arith.constant 0 : i32
    %c0_i32_0 = arith.constant 0 : i32
    return %arg0, %c0_i32 : i32, i32
  }
}

</mosaic_0001>

<bundles_post_ra>
// kernel: tpu_custom_call.1
= control target key start
LH: loop header
LB: loop body
LE: loop exit
PB: predicated region body
PF: predicated region fallthrough
CT: control target
= control target key end

     0   :  { %6 = vsyncpa [#allocation3], 0  ;;  %s175_s0 = inlined_call_operand.hbm [shape: f32[16,128], index: 0, kind: input, shape index: {}]   ;;  %s176_s1 = inlined_call_operand.hbm [shape: f32[8,128], index: 1, kind: output, shape index: {}]  }
   0x1   :  { %7 = vsyncpa [#allocation4], 0  ;;  %s16_s8 = sshll.u32 %s175_s0, 4  ;;  %s155_s9 = smov [#allocation2]   ;;  %s17_s8 = int_to_ptr.hbm [resolvable:$true] %s16_s8 }
   0x2   :  { %s18_s10 = sshll.u32 %s155_s9, 4  ;;  %s156_s11 = smov 128   ;;  %s19_s10 = int_to_ptr.vmem [resolvable:$true] %s18_s10 }
   0x3   :  { %s157_s12 = smov 8  }
   0x4   :  { %24 = dma.hbm_to_vmem [thread:$0]  %s17_s8, 256, %s19_s10, [#allocation3], %s156_s11, %s156_s11, %s157_s12  }
   0x5   :  { %151 = dma.done.wait [#allocation3], 256  }
   0x6   :  { %152 = vsyncadd [#allocation3], 4294967040  ;;  %v37_v0 = vld [vmem:[#allocation2] sm:$0xff]  ;;  %v38_v1 = vld [vmem:[#allocation2 + $0x8] sm:$0xff]  ;;  %s158_s0 = smov [#allocation5]   ;;  %s76_s16 = sshll.u32 %s176_s1, 4  ;;  %s77_s16 = int_to_ptr.hbm [resolvable:$true] %s76_s16 }
   0x7   :  { %v39_v2 = vand.u32 2147483647, %v37_v0  ;;  %v40_v3 = vand.u32 2147483647, %v38_v1  ;;  %s74_s13 = sshll.u32 %s158_s0, 4  ;;  %s75_s13 = int_to_ptr.vmem [resolvable:$true] %s74_s13 }
   0x9   :  { %v41_v4 = vmul.f32 0.5, %v39_v2  ;;  %v42_v5 = vmul.f32 0.5, %v40_v3 }
   0xb   :  { %91 = vtanh.f32 %v41_v4 }
   0xc   :  { %93 = vtanh.f32 %v42_v5 }
  0x11   :  { %v92_v6 = vpop.eup %91 }
  0x12   :  { %v94_v7 = vpop.eup %93  ;;  %v47_v8 = vmax.f32 %v92_v6, 1e-38  ;;  %vm45_vm0 = vcmp.gt.f32.partialorder %v92_v6, 0.0 }
  0x13   :  { %v48_v9 = vmax.f32 %v94_v7, 1e-38  ;;  %vm46_vm1 = vcmp.gt.f32.partialorder %v94_v7, 0.0 }
  0x14   :  { %95 = vlog2.f32 %v47_v8 }
  0x15   :  { %97 = vlog2.f32 %v48_v9 }
  0x1a   :  { %v96_v10 = vpop.eup %95 }
  0x1b   :  { %v98_v11 = vpop.eup %97  ;;  %v50_v12 = vmul.f32 0.6931472, %v96_v10 }
  0x1c   :  { %v52_v13 = vmul.f32 0.6931472, %v98_v11 }
  0x1d   :  { %v53_v14 = vmul.f32 1.6245048, %v50_v12 }
  0x1e   :  { %v54_v15 = vmul.f32 1.6245048, %v52_v13 }
  0x1f   :  { %v55_v16 = vmul.f32 1.442695, %v53_v14 }
  0x20   :  { %v57_v17 = vmul.f32 1.442695, %v54_v15 }
  0x21   :  { %99 = vpow2.f32 %v55_v16 }
  0x22   :  { %101 = vpow2.f32 %v57_v17 }
  0x27   :  { %v100_v18 = vpop.eup %99 }
  0x28   :  { %v102_v19 = vpop.eup %101  ;;  %v59_v20 = vmul.f32 0.32432118, %v100_v18 }
  0x29   :  { %v60_v21 = vmul.f32 0.32432118, %v102_v19 }
  0x2a   :  { %v61_v22 = vsel %vm45_vm0, %v59_v20, 0.0 }
  0x2b   :  { %v62_v23 = vsel %vm46_vm1, %v60_v21, 0.0  ;;  %v63_v24 = vsub.f32 0.5, %v61_v22 }
  0x2c   :  { %v64_v25 = vsub.f32 0.5, %v62_v23 }
  0x2e   :  { %v65_v26 = vadd.f32 %v64_v25, %v63_v24 }
  0x30   :  { %68 = vst [vmem:[#allocation5] sm:$0xff] %v65_v26 }
  0x31   :  { %79 = dma.vmem_to_hbm [thread:$0]  %s75_s13, 128, %s77_s16, [#allocation4]  }
  0x32   :  { %153 = dma.done.wait [#allocation4], 128  }
  0x33   :  { %154 = vsyncadd [#allocation4], 4294967168 }
  0x34   :  { %84 = vsyncpa [#allocation3], 1 }
  0x35   :  { %85 = vsyncpa [#allocation4], 1 }

</bundles_post_ra>
